<compile_context>
chip_gen: v7x
topology: tpu7x:2x2x1
jax: 0.10.0
libtpu: 0.0.40
codegen_flags: <defaults>
</compile_context>

<pallas_src>
import jax
import jax.numpy as jnp
from jax.experimental import pallas as pl
from jax.experimental.pallas import tpu as pltpu

EPS = 1e-5


# ---------------------------------------------------------------------------
# Fused kernel: pad -> conv1+bn+relu -> conv2+bn+relu -> deconv2x2
# ---------------------------------------------------------------------------
def _mid_bridge_kernel(x_ref, b1_ref, sh1_ref, b2_ref, sh2_ref,
                       du_ref, bu_ref, out_ref, xpad1, xpad2):
    # x_ref   : (1, H, W*Cin)        activation, lane layout p = w*Cin + c
    # b1_ref  : (3, W*Cin, W*C1)     lowered conv1 weights (BN1 scale folded)
    # sh1_ref : (1, W*C1)            BN1 shift (incl. conv bias) tiled over W
    # b2_ref  : (3, W*C1, W*C1)      lowered conv2 weights (BN2 scale folded)
    # sh2_ref : (1, W*C1)
    # du_ref  : (2, W*C1, 2*W*Ch)    block-diag deconv weights, per row parity
    # bu_ref  : (1, 2*W*Ch)          deconv bias tiled over (w, kj)
    # out_ref : (1, 2, H, 2*W*Ch)    out[0, ki, h, :] = output row 2h+ki
    # xpad1   : (H+2, W*Cin) scratch (H zero-padding for conv1)
    # xpad2   : (H+2, W*C1)  scratch (H zero-padding for conv2)
    H = x_ref.shape[1]

    def conv3x3_bn_relu(x2d, xpad, b_ref, sh_ref):
        # x2d: (H, W*ci) -> (H, W*co), fused conv + folded-BN + ReLU.
        wc = x2d.shape[1]
        zrow = jnp.zeros((1, wc), jnp.float32)
        xpad[0:1, :] = zrow                    # top zero border
        xpad[H + 1:H + 2, :] = zrow            # bottom zero border
        xpad[1:H + 1, :] = x2d                 # interior (full-lane store)
        acc = jnp.dot(xpad[0:H, :], b_ref[0],
                      preferred_element_type=jnp.float32)
        acc = acc + jnp.dot(xpad[1:H + 1, :], b_ref[1],
                            preferred_element_type=jnp.float32)
        acc = acc + jnp.dot(xpad[2:H + 2, :], b_ref[2],
                            preferred_element_type=jnp.float32)
        return jnp.maximum(acc + sh_ref[...], 0.0)

    y1 = conv3x3_bn_relu(x_ref[0], xpad1, b1_ref, sh1_ref)   # (H, W*C1)
    y2 = conv3x3_bn_relu(y1, xpad2, b2_ref, sh2_ref)         # (H, W*C1)

    # ConvTranspose2d(k=2, s=2): one matmul per output-row parity ki.
    bu = bu_ref[...]
    out_ref[0, 0] = jnp.dot(y2, du_ref[0],
                            preferred_element_type=jnp.float32) + bu  # rows 2h
    out_ref[0, 1] = jnp.dot(y2, du_ref[1],
                            preferred_element_type=jnp.float32) + bu  # rows 2h+1


# ---------------------------------------------------------------------------
# Weight lowering (wrapper side, folded into the XLA graph)
# ---------------------------------------------------------------------------
def _bn_fold(gamma, beta, mean, var, conv_bias):
    scale = gamma / jnp.sqrt(var + EPS)
    shift = beta + scale * (conv_bias - mean)
    return scale, shift


def _lowered_conv_weight(conv_w, W, scale):
    # conv_w: PyTorch (Cout, Cin, 3, 3) -> (3, W*Cin, W*Cout) with
    # B[ki, wp*Cin + c, w*Cout + o] = scale[o] * conv_w[o, c, ki, wp - w + 1]
    # (taps falling outside [0, W) are dropped => zero padding along W).
    ci = conv_w.shape[1]
    co = conv_w.shape[0]
    wt = jnp.transpose(conv_w, (2, 3, 1, 0)) * scale          # (ki, kj, ci, co)
    p = jnp.arange(W)
    sel = (p[None, :, None] ==
           p[None, None, :] + jnp.arange(3)[:, None, None] - 1)
    sel = sel.astype(jnp.float32)                              # (kj, wp, w)
    B = jnp.einsum("jpw,kjio->kpiwo", sel, wt)                 # (ki, wp, ci, w, co)
    return B.reshape(3, W * ci, W * co)


def _lowered_deconv_weight(up_w, W):
    # up_w: PyTorch ConvTranspose2d (Cin, Ch, 2, 2) ->
    # D[ki, v*Cin + i, w*2Ch + kj*Ch + c] = (v == w) * up_w[i, c, ki, kj]
    c1, ch = up_w.shape[0], up_w.shape[1]
    eye_w = jnp.eye(W, dtype=jnp.float32)
    D = jnp.einsum("vw,ickn->kviwnc", eye_w, up_w)             # (ki, v, i, w, kj, c)
    return D.reshape(2, W * c1, W * 2 * ch)


# ---------------------------------------------------------------------------
# Forward wrapper (NCHW in / NCHW out, like the PyTorch module)
# ---------------------------------------------------------------------------
def mid_bridge_forward(x_nchw, params, out_c):
    # TODO(synk): nn.Dropout() is identity in inference mode (no RNG mask).
    N, Cin, H, W = x_nchw.shape
    C1 = out_c
    Ch = out_c // 2

    # NCHW -> lane-dense (N, H, W*Cin); tiny, single XLA transpose.
    x = jnp.transpose(x_nchw, (0, 2, 3, 1)).astype(jnp.float32)
    x_flat = x.reshape(N, H, W * Cin)

    s1, sh1 = _bn_fold(params["bn1_gamma"], params["bn1_beta"],
                       params["bn1_mean"], params["bn1_var"], params["conv1_b"])
    s2, sh2 = _bn_fold(params["bn2_gamma"], params["bn2_beta"],
                       params["bn2_mean"], params["bn2_var"], params["conv2_b"])
    B1 = _lowered_conv_weight(params["conv1_w"], W, s1)        # (3, W*Cin, W*C1)
    B2 = _lowered_conv_weight(params["conv2_w"], W, s2)        # (3, W*C1,  W*C1)
    sh1_row = jnp.tile(sh1, W)[None, :]                        # (1, W*C1)
    sh2_row = jnp.tile(sh2, W)[None, :]
    DU = _lowered_deconv_weight(params["up_w"], W)             # (2, W*C1, 2*W*Ch)
    bu_row = jnp.tile(params["up_b"], 2 * W)[None, :]          # (1, 2*W*Ch)

    y_k = pl.pallas_call(
        _mid_bridge_kernel,
        out_shape=jax.ShapeDtypeStruct((N, 2, H, 2 * W * Ch), jnp.float32),
        grid=(N,),
        in_specs=[
            pl.BlockSpec((1, H, W * Cin), lambda n: (n, 0, 0)),
            pl.BlockSpec((3, W * Cin, W * C1), lambda n: (0, 0, 0)),
            pl.BlockSpec((1, W * C1), lambda n: (0, 0)),
            pl.BlockSpec((3, W * C1, W * C1), lambda n: (0, 0, 0)),
            pl.BlockSpec((1, W * C1), lambda n: (0, 0)),
            pl.BlockSpec((2, W * C1, 2 * W * Ch), lambda n: (0, 0, 0)),
            pl.BlockSpec((1, 2 * W * Ch), lambda n: (0, 0)),
        ],
        out_specs=pl.BlockSpec((1, 2, H, 2 * W * Ch), lambda n: (n, 0, 0, 0)),
        scratch_shapes=[
            pltpu.VMEM((H + 2, W * Cin), jnp.float32),
            pltpu.VMEM((H + 2, W * C1), jnp.float32),
        ],
        compiler_params=pltpu.CompilerParams(
            dimension_semantics=("parallel",)),   # shards batch on v7x's 2 TCs
    )(x_flat, B1, sh1_row, B2, sh2_row, DU, bu_row)

    # y_k[n, ki, h, w*2Ch + kj*Ch + c] = out_nhwc[n, 2h+ki, 2w+kj, c]
    # Single tiny transpose to the PyTorch NCHW contract (also does the
    # layout conversion, so no extra interleave op is needed).
    y = y_k.reshape(N, 2, H, W, 2, Ch)
    y = jnp.transpose(y, (0, 5, 2, 1, 3, 4))                   # (N, Ch, H, 2, W, 2)
    return y.reshape(N, Ch, 2 * H, 2 * W)


# ---------------------------------------------------------------------------
# Parameter construction (deterministic)
# ---------------------------------------------------------------------------
def make_params(key, in_c, out_c):
    half = out_c // 2
    ks = jax.random.split(key, 12)
    p = {}
    p["conv1_w"] = 0.1 * jax.random.normal(ks[0], (out_c, in_c, 3, 3), jnp.float32)
    p["conv1_b"] = 0.1 * jax.random.normal(ks[1], (out_c,), jnp.float32)
    p["bn1_gamma"] = 1.0 + 0.1 * jax.random.normal(ks[2], (out_c,), jnp.float32)
    p["bn1_beta"] = 0.1 * jax.random.normal(ks[3], (out_c,), jnp.float32)
    p["bn1_mean"] = 0.1 * jax.random.normal(ks[4], (out_c,), jnp.float32)
    p["bn1_var"] = 0.5 + jnp.abs(jax.random.normal(ks[5], (out_c,), jnp.float32))
    p["conv2_w"] = 0.1 * jax.random.normal(ks[6], (out_c, out_c, 3, 3), jnp.float32)
    p["conv2_b"] = 0.1 * jax.random.normal(ks[7], (out_c,), jnp.float32)
    p["bn2_gamma"] = 1.0 + 0.1 * jax.random.normal(ks[8], (out_c,), jnp.float32)
    p["bn2_beta"] = 0.1 * jax.random.normal(ks[9], (out_c,), jnp.float32)
    p["bn2_mean"] = 0.1 * jax.random.normal(ks[10], (out_c,), jnp.float32)
    p["bn2_var"] = 0.5 + jnp.abs(jax.random.normal(ks[11], (out_c,), jnp.float32))
    ku = jax.random.split(ks[0], 2)
    p["up_w"] = 0.1 * jax.random.normal(ku[0], (out_c, half, 2, 2), jnp.float32)
    p["up_b"] = 0.1 * jax.random.normal(ku[1], (half,), jnp.float32)
    return p


# ---------------------------------------------------------------------------
# Pure-JAX reference (independent of the kernel) for correctness checking
# ---------------------------------------------------------------------------
def _ref_forward(x_nchw, p, out_c):
    x = jnp.transpose(x_nchw, (0, 2, 3, 1)).astype(jnp.float32)

    def conv_bn_relu(x, w, b, g, be, m, v):
        w_hwio = jnp.transpose(w, (2, 3, 1, 0))
        y = jax.lax.conv_general_dilated(
            x, w_hwio, (1, 1), "SAME",
            dimension_numbers=("NHWC", "HWIO", "NHWC")) + b
        y = (y - m) / jnp.sqrt(v + EPS) * g + be
        return jnp.maximum(y, 0.0)

    x = conv_bn_relu(x, p["conv1_w"], p["conv1_b"], p["bn1_gamma"],
                     p["bn1_beta"], p["bn1_mean"], p["bn1_var"])
    x = conv_bn_relu(x, p["conv2_w"], p["conv2_b"], p["bn2_gamma"],
                     p["bn2_beta"], p["bn2_mean"], p["bn2_var"])

    # ConvTranspose2d(k=2, s=2): out[n, 2i+ki, 2j+kj, o] = sum_c x*W + b
    N, H, W, _ = x.shape
    half = out_c // 2
    t = jnp.einsum("nhwi,iokl->nhkwlo", x, p["up_w"])
    y = t.reshape(N, 2 * H, 2 * W, half) + p["up_b"]
    return jnp.transpose(y, (0, 3, 1, 2))


if __name__ == "__main__":
    in_c, out_c = 4, 8
    N, H, W = 2, 16, 16

    key = jax.random.PRNGKey(0)
    kx, kp = jax.random.split(key)
    x = jax.random.normal(kx, (N, in_c, H, W), jnp.float32)   # NCHW like PyTorch
    params = make_params(kp, in_c, out_c)

    fwd = jax.jit(lambda xx: mid_bridge_forward(xx, params, out_c))
    out = jax.block_until_ready(fwd(x))

    ref = jax.block_until_ready(_ref_forward(x, params, out_c))

    assert out.shape == (N, out_c // 2, 2 * H, 2 * W), out.shape
    assert jnp.allclose(out, ref, rtol=1e-4, atol=1e-4), float(
        jnp.max(jnp.abs(out - ref)))

    print("KERNEL_OK")
</pallas_src>

<mosaic_0001>
module attributes {stable_mosaic.version = 11 : i64} {
  func.func @_mid_bridge_kernel(%arg0: i32, %arg1: memref<1x16x64xf32, #tpu.memory_space<vmem>>, %arg2: memref<3x64x128xf32, #tpu.memory_space<vmem>>, %arg3: memref<1x128xf32, #tpu.memory_space<vmem>>, %arg4: memref<3x128x128xf32, #tpu.memory_space<vmem>>, %arg5: memref<1x128xf32, #tpu.memory_space<vmem>>, %arg6: memref<2x128x128xf32, #tpu.memory_space<vmem>>, %arg7: memref<1x128xf32, #tpu.memory_space<vmem>>, %arg8: memref<1x2x16x128xf32, #tpu.memory_space<vmem>>, %arg9: memref<18x64xf32, #tpu.memory_space<vmem>>, %arg10: memref<18x128xf32, #tpu.memory_space<vmem>>) attributes {dimension_semantics = [#tpu.dimension_semantics<parallel>], iteration_bounds = array<i64: 2>, scalar_prefetch = 0 : i64, scratch_operands = 2 : i64, tpu.core_type = #tpu.core_type<tc>, window_params = [{transform_indices = @transform_0, window_bounds = array<i64: 1, 16, 64>}, {pipeline_mode = #tpu.pipeline_mode<synchronous>, transform_indices = @transform_1, window_bounds = array<i64: 3, 64, 128>}, {pipeline_mode = #tpu.pipeline_mode<synchronous>, transform_indices = @transform_2, window_bounds = array<i64: 1, 128>}, {pipeline_mode = #tpu.pipeline_mode<synchronous>, transform_indices = @transform_3, window_bounds = array<i64: 3, 128, 128>}, {pipeline_mode = #tpu.pipeline_mode<synchronous>, transform_indices = @transform_4, window_bounds = array<i64: 1, 128>}, {pipeline_mode = #tpu.pipeline_mode<synchronous>, transform_indices = @transform_5, window_bounds = array<i64: 2, 128, 128>}, {pipeline_mode = #tpu.pipeline_mode<synchronous>, transform_indices = @transform_6, window_bounds = array<i64: 1, 128>}, {transform_indices = @transform_7, window_bounds = array<i64: 1, 2, 16, 128>}]} {
    %c0 = arith.constant 0 : index
    %c0_0 = arith.constant 0 : index
    %c0_1 = arith.constant 0 : index
    %0 = vector.load %arg1[%c0, %c0_0, %c0_1] : memref<1x16x64xf32, #tpu.memory_space<vmem>>, vector<1x16x64xf32>
    %1 = vector.shape_cast %0 : vector<1x16x64xf32> to vector<16x64xf32>
    %cst = arith.constant 0.000000e+00 : f32
    %2 = vector.broadcast %cst : f32 to vector<1x64xf32>
    %c0_2 = arith.constant 0 : index
    %c0_3 = arith.constant 0 : index
    %3 = vector.load %arg9[%c0_2, %c0_3] : memref<18x64xf32, #tpu.memory_space<vmem>>, vector<1x64xf32>
    tpu.vector_store %arg9[%c0_2, %c0_3], %2 {strides = array<i32>} : memref<18x64xf32, #tpu.memory_space<vmem>>, vector<1x64xf32>,
    %c17 = arith.constant 17 : index
    %c0_4 = arith.constant 0 : index
    %4 = vector.load %arg9[%c17, %c0_4] : memref<18x64xf32, #tpu.memory_space<vmem>>, vector<1x64xf32>
    tpu.vector_store %arg9[%c17, %c0_4], %2 {strides = array<i32>} : memref<18x64xf32, #tpu.memory_space<vmem>>, vector<1x64xf32>,
    %c1 = arith.constant 1 : index
    %c0_5 = arith.constant 0 : index
    %5 = vector.load %arg9[%c1, %c0_5] : memref<18x64xf32, #tpu.memory_space<vmem>>, vector<16x64xf32>
    tpu.vector_store %arg9[%c1, %c0_5], %1 {strides = array<i32>} : memref<18x64xf32, #tpu.memory_space<vmem>>, vector<16x64xf32>,
    %c0_6 = arith.constant 0 : index
    %c0_7 = arith.constant 0 : index
    %6 = vector.load %arg9[%c0_6, %c0_7] : memref<18x64xf32, #tpu.memory_space<vmem>>, vector<16x64xf32>
    %c0_8 = arith.constant 0 : index
    %c0_9 = arith.constant 0 : index
    %c0_10 = arith.constant 0 : index
    %7 = vector.load %arg2[%c0_8, %c0_9, %c0_10] : memref<3x64x128xf32, #tpu.memory_space<vmem>>, vector<1x64x128xf32>
    %8 = vector.shape_cast %7 : vector<1x64x128xf32> to vector<64x128xf32>
    %cst_11 = arith.constant dense<0.000000e+00> : vector<16x128xf32>
    %9 = tpu.matmul %6, %8, %cst_11 {dimension_numbers = #tpu.dot_dimension_numbers<[1], [0], [0], [1], [0, 0, 1, 1], [], []>} : vector<16x64xf32>, vector<64x128xf32>, vector<16x128xf32> -> vector<16x128xf32>
    %c1_12 = arith.constant 1 : index
    %c0_13 = arith.constant 0 : index
    %10 = vector.load %arg9[%c1_12, %c0_13] : memref<18x64xf32, #tpu.memory_space<vmem>>, vector<16x64xf32>
    %c1_14 = arith.constant 1 : index
    %c0_15 = arith.constant 0 : index
    %c0_16 = arith.constant 0 : index
    %11 = vector.load %arg2[%c1_14, %c0_15, %c0_16] : memref<3x64x128xf32, #tpu.memory_space<vmem>>, vector<1x64x128xf32>
    %12 = vector.shape_cast %11 : vector<1x64x128xf32> to vector<64x128xf32>
    %cst_17 = arith.constant dense<0.000000e+00> : vector<16x128xf32>
    %13 = tpu.matmul %10, %12, %cst_17 {dimension_numbers = #tpu.dot_dimension_numbers<[1], [0], [0], [1], [0, 0, 1, 1], [], []>} : vector<16x64xf32>, vector<64x128xf32>, vector<16x128xf32> -> vector<16x128xf32>
    %14 = arith.addf %9, %13 : vector<16x128xf32>
    %c2 = arith.constant 2 : index
    %c0_18 = arith.constant 0 : index
    %15 = vector.load %arg9[%c2, %c0_18] : memref<18x64xf32, #tpu.memory_space<vmem>>, vector<16x64xf32>
    %c2_19 = arith.constant 2 : index
    %c0_20 = arith.constant 0 : index
    %c0_21 = arith.constant 0 : index
    %16 = vector.load %arg2[%c2_19, %c0_20, %c0_21] : memref<3x64x128xf32, #tpu.memory_space<vmem>>, vector<1x64x128xf32>
    %17 = vector.shape_cast %16 : vector<1x64x128xf32> to vector<64x128xf32>
    %cst_22 = arith.constant dense<0.000000e+00> : vector<16x128xf32>
    %18 = tpu.matmul %15, %17, %cst_22 {dimension_numbers = #tpu.dot_dimension_numbers<[1], [0], [0], [1], [0, 0, 1, 1], [], []>} : vector<16x64xf32>, vector<64x128xf32>, vector<16x128xf32> -> vector<16x128xf32>
    %19 = arith.addf %14, %18 : vector<16x128xf32>
    %c0_23 = arith.constant 0 : index
    %c0_24 = arith.constant 0 : index
    %20 = vector.load %arg3[%c0_23, %c0_24] : memref<1x128xf32, #tpu.memory_space<vmem>>, vector<1x128xf32>
    %21 = vector.broadcast %20 : vector<1x128xf32> to vector<16x128xf32>
    %22 = arith.addf %19, %21 : vector<16x128xf32>
    %cst_25 = arith.constant 0.000000e+00 : f32
    %23 = vector.broadcast %cst_25 : f32 to vector<16x128xf32>
    %24 = arith.maximumf %22, %23 : vector<16x128xf32>
    %cst_26 = arith.constant 0.000000e+00 : f32
    %25 = vector.broadcast %cst_26 : f32 to vector<1x128xf32>
    %c0_27 = arith.constant 0 : index
    %c0_28 = arith.constant 0 : index
    %26 = vector.load %arg10[%c0_27, %c0_28] : memref<18x128xf32, #tpu.memory_space<vmem>>, vector<1x128xf32>
    tpu.vector_store %arg10[%c0_27, %c0_28], %25 {strides = array<i32>} : memref<18x128xf32, #tpu.memory_space<vmem>>, vector<1x128xf32>,
    %c17_29 = arith.constant 17 : index
    %c0_30 = arith.constant 0 : index
    %27 = vector.load %arg10[%c17_29, %c0_30] : memref<18x128xf32, #tpu.memory_space<vmem>>, vector<1x128xf32>
    tpu.vector_store %arg10[%c17_29, %c0_30], %25 {strides = array<i32>} : memref<18x128xf32, #tpu.memory_space<vmem>>, vector<1x128xf32>,
    %c1_31 = arith.constant 1 : index
    %c0_32 = arith.constant 0 : index
    %28 = vector.load %arg10[%c1_31, %c0_32] : memref<18x128xf32, #tpu.memory_space<vmem>>, vector<16x128xf32>
    tpu.vector_store %arg10[%c1_31, %c0_32], %24 {strides = array<i32>} : memref<18x128xf32, #tpu.memory_space<vmem>>, vector<16x128xf32>,
    %c0_33 = arith.constant 0 : index
    %c0_34 = arith.constant 0 : index
    %29 = vector.load %arg10[%c0_33, %c0_34] : memref<18x128xf32, #tpu.memory_space<vmem>>, vector<16x128xf32>
    %c0_35 = arith.constant 0 : index
    %c0_36 = arith.constant 0 : index
    %c0_37 = arith.constant 0 : index
    %30 = vector.load %arg4[%c0_35, %c0_36, %c0_37] : memref<3x128x128xf32, #tpu.memory_space<vmem>>, vector<1x128x128xf32>
    %31 = vector.shape_cast %30 : vector<1x128x128xf32> to vector<128x128xf32>
    %cst_38 = arith.constant dense<0.000000e+00> : vector<16x128xf32>
    %32 = tpu.matmul %29, %31, %cst_38 {dimension_numbers = #tpu.dot_dimension_numbers<[1], [0], [0], [1], [0, 0, 1, 1], [], []>} : vector<16x128xf32>, vector<128x128xf32>, vector<16x128xf32> -> vector<16x128xf32>
    %c1_39 = arith.constant 1 : index
    %c0_40 = arith.constant 0 : index
    %33 = vector.load %arg10[%c1_39, %c0_40] : memref<18x128xf32, #tpu.memory_space<vmem>>, vector<16x128xf32>
    %c1_41 = arith.constant 1 : index
    %c0_42 = arith.constant 0 : index
    %c0_43 = arith.constant 0 : index
    %34 = vector.load %arg4[%c1_41, %c0_42, %c0_43] : memref<3x128x128xf32, #tpu.memory_space<vmem>>, vector<1x128x128xf32>
    %35 = vector.shape_cast %34 : vector<1x128x128xf32> to vector<128x128xf32>
    %cst_44 = arith.constant dense<0.000000e+00> : vector<16x128xf32>
    %36 = tpu.matmul %33, %35, %cst_44 {dimension_numbers = #tpu.dot_dimension_numbers<[1], [0], [0], [1], [0, 0, 1, 1], [], []>} : vector<16x128xf32>, vector<128x128xf32>, vector<16x128xf32> -> vector<16x128xf32>
    %37 = arith.addf %32, %36 : vector<16x128xf32>
    %c2_45 = arith.constant 2 : index
    %c0_46 = arith.constant 0 : index
    %38 = vector.load %arg10[%c2_45, %c0_46] : memref<18x128xf32, #tpu.memory_space<vmem>>, vector<16x128xf32>
    %c2_47 = arith.constant 2 : index
    %c0_48 = arith.constant 0 : index
    %c0_49 = arith.constant 0 : index
    %39 = vector.load %arg4[%c2_47, %c0_48, %c0_49] : memref<3x128x128xf32, #tpu.memory_space<vmem>>, vector<1x128x128xf32>
    %40 = vector.shape_cast %39 : vector<1x128x128xf32> to vector<128x128xf32>
    %cst_50 = arith.constant dense<0.000000e+00> : vector<16x128xf32>
    %41 = tpu.matmul %38, %40, %cst_50 {dimension_numbers = #tpu.dot_dimension_numbers<[1], [0], [0], [1], [0, 0, 1, 1], [], []>} : vector<16x128xf32>, vector<128x128xf32>, vector<16x128xf32> -> vector<16x128xf32>
    %42 = arith.addf %37, %41 : vector<16x128xf32>
    %c0_51 = arith.constant 0 : index
    %c0_52 = arith.constant 0 : index
    %43 = vector.load %arg5[%c0_51, %c0_52] : memref<1x128xf32, #tpu.memory_space<vmem>>, vector<1x128xf32>
    %44 = vector.broadcast %43 : vector<1x128xf32> to vector<16x128xf32>
    %45 = arith.addf %42, %44 : vector<16x128xf32>
    %cst_53 = arith.constant 0.000000e+00 : f32
    %46 = vector.broadcast %cst_53 : f32 to vector<16x128xf32>
    %47 = arith.maximumf %45, %46 : vector<16x128xf32>
    %c0_54 = arith.constant 0 : index
    %c0_55 = arith.constant 0 : index
    %48 = vector.load %arg7[%c0_54, %c0_55] : memref<1x128xf32, #tpu.memory_space<vmem>>, vector<1x128xf32>
    %c0_56 = arith.constant 0 : index
    %c0_57 = arith.constant 0 : index
    %c0_58 = arith.constant 0 : index
    %49 = vector.load %arg6[%c0_56, %c0_57, %c0_58] : memref<2x128x128xf32, #tpu.memory_space<vmem>>, vector<1x128x128xf32>
    %50 = vector.shape_cast %49 : vector<1x128x128xf32> to vector<128x128xf32>
    %cst_59 = arith.constant dense<0.000000e+00> : vector<16x128xf32>
    %51 = tpu.matmul %47, %50, %cst_59 {dimension_numbers = #tpu.dot_dimension_numbers<[1], [0], [0], [1], [0, 0, 1, 1], [], []>} : vector<16x128xf32>, vector<128x128xf32>, vector<16x128xf32> -> vector<16x128xf32>
    %52 = vector.broadcast %48 : vector<1x128xf32> to vector<16x128xf32>
    %53 = arith.addf %51, %52 : vector<16x128xf32>
    %c0_60 = arith.constant 0 : index
    %c0_61 = arith.constant 0 : index
    %c0_62 = arith.constant 0 : index
    %c0_63 = arith.constant 0 : index
    %54 = vector.load %arg8[%c0_60, %c0_61, %c0_62, %c0_63] : memref<1x2x16x128xf32, #tpu.memory_space<vmem>>, vector<1x1x16x128xf32>
    %55 = vector.shape_cast %54 : vector<1x1x16x128xf32> to vector<16x128xf32>
    %56 = vector.shape_cast %53 : vector<16x128xf32> to vector<1x1x16x128xf32>
    tpu.vector_store %arg8[%c0_60, %c0_61, %c0_62, %c0_63], %56 {strides = array<i32>} : memref<1x2x16x128xf32, #tpu.memory_space<vmem>>, vector<1x1x16x128xf32>,
    %c1_64 = arith.constant 1 : index
    %c0_65 = arith.constant 0 : index
    %c0_66 = arith.constant 0 : index
    %57 = vector.load %arg6[%c1_64, %c0_65, %c0_66] : memref<2x128x128xf32, #tpu.memory_space<vmem>>, vector<1x128x128xf32>
    %58 = vector.shape_cast %57 : vector<1x128x128xf32> to vector<128x128xf32>
    %cst_67 = arith.constant dense<0.000000e+00> : vector<16x128xf32>
    %59 = tpu.matmul %47, %58, %cst_67 {dimension_numbers = #tpu.dot_dimension_numbers<[1], [0], [0], [1], [0, 0, 1, 1], [], []>} : vector<16x128xf32>, vector<128x128xf32>, vector<16x128xf32> -> vector<16x128xf32>
    %60 = vector.broadcast %48 : vector<1x128xf32> to vector<16x128xf32>
    %61 = arith.addf %59, %60 : vector<16x128xf32>
    %c0_68 = arith.constant 0 : index
    %c1_69 = arith.constant 1 : index
    %c0_70 = arith.constant 0 : index
    %c0_71 = arith.constant 0 : index
    %62 = vector.load %arg8[%c0_68, %c1_69, %c0_70, %c0_71] : memref<1x2x16x128xf32, #tpu.memory_space<vmem>>, vector<1x1x16x128xf32>
    %63 = vector.shape_cast %62 : vector<1x1x16x128xf32> to vector<16x128xf32>
    %64 = vector.shape_cast %61 : vector<16x128xf32> to vector<1x1x16x128xf32>
    tpu.vector_store %arg8[%c0_68, %c1_69, %c0_70, %c0_71], %64 {strides = array<i32>} : memref<1x2x16x128xf32, #tpu.memory_space<vmem>>, vector<1x1x16x128xf32>,
    return
  }
  func.func @transform_0(%arg0: i32) -> (i32, i32, i32) {
    %c0_i32 = arith.constant 0 : i32
    %c0_i32_0 = arith.constant 0 : i32
    %c0_i32_1 = arith.constant 0 : i32
    return %arg0, %c0_i32, %c0_i32_0 : i32, i32, i32
  }
  func.func @transform_1(%arg0: i32) -> (i32, i32, i32) {
    %c0_i32 = arith.constant 0 : i32
    %c0_i32_0 = arith.constant 0 : i32
    %c0_i32_1 = arith.constant 0 : i32
    %c0_i32_2 = arith.constant 0 : i32
    return %c0_i32, %c0_i32_0, %c0_i32_1 : i32, i32, i32
  }
  func.func @transform_2(%arg0: i32) -> (i32, i32) {
    %c0_i32 = arith.constant 0 : i32
    %c0_i32_0 = arith.constant 0 : i32
    %c0_i32_1 = arith.constant 0 : i32
    return %c0_i32, %c0_i32_0 : i32, i32
  }
  func.func @transform_3(%arg0: i32) -> (i32, i32, i32) {
    %c0_i32 = arith.constant 0 : i32
    %c0_i32_0 = arith.constant 0 : i32
    %c0_i32_1 = arith.constant 0 : i32
    %c0_i32_2 = arith.constant 0 : i32
    return %c0_i32, %c0_i32_0, %c0_i32_1 : i32, i32, i32
  }
  func.func @transform_4(%arg0: i32) -> (i32, i32) {
    %c0_i32 = arith.constant 0 : i32
    %c0_i32_0 = arith.constant 0 : i32
    %c0_i32_1 = arith.constant 0 : i32
    return %c0_i32, %c0_i32_0 : i32, i32
  }
  func.func @transform_5(%arg0: i32) -> (i32, i32, i32) {
    %c0_i32 = arith.constant 0 : i32
    %c0_i32_0 = arith.constant 0 : i32
    %c0_i32_1 = arith.constant 0 : i32
    %c0_i32_2 = arith.constant 0 : i32
    return %c0_i32, %c0_i32_0, %c0_i32_1 : i32, i32, i32
  }
  func.func @transform_6(%arg0: i32) -> (i32, i32) {
    %c0_i32 = arith.constant 0 : i32
    %c0_i32_0 = arith.constant 0 : i32
    %c0_i32_1 = arith.constant 0 : i32
    return %c0_i32, %c0_i32_0 : i32, i32
  }
  func.func @transform_7(%arg0: i32) -> (i32, i32, i32, i32) {
    %c0_i32 = arith.constant 0 : i32
    %c0_i32_0 = arith.constant 0 : i32
    %c0_i32_1 = arith.constant 0 : i32
    %c0_i32_2 = arith.constant 0 : i32
    return %arg0, %c0_i32, %c0_i32_0, %c0_i32_1 : i32, i32, i32, i32
  }
}

</mosaic_0001>

<bundles_post_ra>
// kernel: tile.22
= control target key start
LH: loop header
LB: loop body
LE: loop exit
PB: predicated region body
PF: predicated region fallthrough
CT: control target
= control target key end

     0   :  { %s40_s0 = inlined_call_operand.vmem [shape: f32[4], index: 0, kind: input, shape index: {}]   ;;  %s41_s1 = inlined_call_operand.vmem [shape: f32[32,4], index: 1, kind: output, shape index: {}]  }
   0x1   :  { %v4_v0 = vld [vmem:[%s40_s0] ss:$0 sm:$0xff] }
   0x2   :  { %5 = vst [vmem:[%s41_s1] sm:$0xff] %v4_v0  ;;  %12 = vst [vmem:[%s41_s1 + $0x8] sm:$0xff] %v4_v0 }
   0x3   :  { %13 = vst [vmem:[%s41_s1 + $0x10] sm:$0xff] %v4_v0  ;;  %14 = vst [vmem:[%s41_s1 + $0x18] sm:$0xff] %v4_v0 }

// kernel: tile.23
= control target key start
LH: loop header
LB: loop body
LE: loop exit
PB: predicated region body
PF: predicated region fallthrough
CT: control target
= control target key end

     0   :  { %s259_s10 = smov 124   ;;  %s260_s11 = smov 116   ;;  %vm3_vm0 = vcmask 31744   ;;  %vm9_vm1 = vcmask 1048544   ;;  %vm15_vm2 = vcmask 1015744   ;;  %vm21_vm3 = vcmask 982944   ;;  %s399_s0 = inlined_call_operand.vmem [shape: f32[32,4], index: 0, kind: input, shape index: {}]   ;;  %s400_s1 = inlined_call_operand.vmem [shape: f32[1,128], index: 1, kind: output, shape index: {}]  }
   0x1   :  { %v197_v0 = vld [vmem:[%s399_s0 + $0x1f] sm:$0x1]   ;;  %v199_v1 = vld [vmem:[%s399_s0 + $0x1d] sm:$0x1]   ;;  %v198_v2 = vld [vmem:[%s399_s0 + $0x1e] sm:$0x1]  }
   0x2   :  { %7 = vrot.lane.b32.xlu0 %v197_v0, %s259_s10  ;;  %19 = vrot.lane.b32.xlu1 %v199_v1, %s260_s11  ;;  %v200_v3 = vld [vmem:[%s399_s0 + $0x1c] sm:$0x1]   ;;  %s261_s16 = smov 120   ;;  %s262_s17 = smov 112   ;;  %v201_v4 = vld [vmem:[%s399_s0 + $0x1b] sm:$0x1]  }
   0x3   :  { %v202_v5 = vld [vmem:[%s399_s0 + $0x1a] sm:$0x1]   ;;  %s263_s22 = smov 108   ;;  %s264_s23 = smov 104   ;;  %v203_v6 = vld [vmem:[%s399_s0 + $0x19] sm:$0x1]  }
   0x4   :  { %v204_v7 = vld [vmem:[%s399_s0 + $0x18] sm:$0x1]   ;;  %s265_s28 = smov 100   ;;  %s266_s29 = smov 96   ;;  %v205_v8 = vld [vmem:[%s399_s0 + $0x17] sm:$0x1]  }
   0x5   :  { %v206_v9 = vld [vmem:[%s399_s0 + $0x16] sm:$0x1]   ;;  %v2_v10 = vld [vmem:[%s399_s0] sm:$0x1]   ;;  %s267_s7 = smov 92   ;;  %s268_s8 = smov 88  }
   0x6   :  { %13 = vrot.lane.b32.xlu0 %v198_v2, %s261_s16  ;;  %25 = vrot.lane.b32.xlu1 %v200_v3, %s262_s17  ;;  %4 = vst.msk [vmem:[#allocation0] sm:$0x1] %vm3_vm0, %v2_v10   ;;  %v207_v11 = vld [vmem:[%s399_s0 + $0x15] sm:$0x1]   ;;  %v208_v12 = vld [vmem:[%s399_s0 + $0x14] sm:$0x1]  }
   0x7   :  { %s269_s13 = smov 84   ;;  %s270_s14 = smov 80   ;;  %v209_v13 = vld [vmem:[%s399_s0 + $0x13] sm:$0x1]   ;;  %v210_v14 = vld [vmem:[%s399_s0 + $0x12] sm:$0x1]  }
   0x8   :  { %s271_s19 = smov 76   ;;  %s272_s20 = smov 72   ;;  %v211_v15 = vld [vmem:[%s399_s0 + $0x11] sm:$0x1]   ;;  %v212_v16 = vld [vmem:[%s399_s0 + $0x10] sm:$0x1]  }
   0x9   :  { %s273_s25 = smov 68   ;;  %s274_s26 = smov 64   ;;  %v213_v17 = vld [vmem:[%s399_s0 + $0xf] sm:$0x1]   ;;  %v214_v18 = vld [vmem:[%s399_s0 + $0xe] sm:$0x1]  }
   0xa   :  { %31 = vrot.lane.b32.xlu0 %v201_v4, %s263_s22  ;;  %37 = vrot.lane.b32.xlu1 %v202_v5, %s264_s23  ;;  %s275_s2 = smov 60   ;;  %s276_s3 = smov 56   ;;  %v215_v19 = vld [vmem:[%s399_s0 + $0xd] sm:$0x1]   ;;  %v216_v20 = vld [vmem:[%s399_s0 + $0xc] sm:$0x1]  }
   0xb   :  { %s278_s9 = smov 48   ;;  %v217_v21 = vld [vmem:[%s399_s0 + $0xb] sm:$0x1]   ;;  %v218_v22 = vld [vmem:[%s399_s0 + $0xa] sm:$0x1]   ;;  %s280_s15 = smov 40  }
   0xc   :  { %v219_v23 = vld [vmem:[%s399_s0 + $0x9] sm:$0x1]   ;;  %v220_v24 = vld [vmem:[%s399_s0 + $0x8] sm:$0x1]   ;;  %s282_s21 = smov 32   ;;  %s284_s27 = smov 24  }
   0xd   :  { %v221_v25 = vld [vmem:[%s399_s0 + $0x7] sm:$0x1]   ;;  %v222_v26 = vld [vmem:[%s399_s0 + $0x6] sm:$0x1]   ;;  %v223_v27 = vld [vmem:[%s399_s0 + $0x5] sm:$0x1]  }
   0xe   :  { %43 = vrot.lane.b32.xlu0 %v203_v6, %s265_s28  ;;  %49 = vrot.lane.b32.xlu1 %v204_v7, %s266_s29  ;;  %v224_v28 = vld [vmem:[%s399_s0 + $0x4] sm:$0x1]   ;;  %s286_s4 = smov 16   ;;  %v225_v29 = vld [vmem:[%s399_s0 + $0x3] sm:$0x1]   ;;  %s288_s10 = smov 8  }
   0xf   :  { %v226_v30 = vld [vmem:[%s399_s0 + $0x2] sm:$0x1]   ;;  %v227_v31 = vld [vmem:[%s399_s0 + $0x1] sm:$0x1]   ;;  %s289_s0 = smov 4   ;;  %vm27_vm4 = vcmask 950144  }
  0x10   :  { %vm33_vm5 = vcmask 917344   ;;  %vm39_vm6 = vcmask 884544   ;;  %vm45_vm7 = vcmask 851744   ;;  %vm51_vm8 = vcmask 818944  }
  0x11   :  { %vm57_vm9 = vcmask 786144   ;;  %vm63_vm10 = vcmask 753344   ;;  %vm69_vm11 = vcmask 720544   ;;  %vm75_vm12 = vcmask 687744  }
  0x12   :  { %55 = vrot.lane.b32.xlu0 %v205_v8, %s267_s7  ;;  %61 = vrot.lane.b32.xlu1 %v206_v9, %s268_s8  ;;  %s277_s8 = smov 52   ;;  %vm81_vm13 = vcmask 654944   ;;  %vm87_vm14 = vcmask 622144   ;;  %vm93_vm15 = vcmask 589344   ;;  %vm99_vm0 = vcmask 556544  }
  0x16   :  { %67 = vrot.lane.b32.xlu0 %v207_v11, %s269_s13  ;;  %73 = vrot.lane.b32.xlu1 %v208_v12, %s270_s14  ;;  %s279_s14 = smov 44  }
  0x1a   :  { %79 = vrot.lane.b32.xlu0 %v209_v13, %s271_s19  ;;  %85 = vrot.lane.b32.xlu1 %v210_v14, %s272_s20  ;;  %s281_s20 = smov 36  }
  0x1e   :  { %91 = vrot.lane.b32.xlu0 %v211_v15, %s273_s25  ;;  %97 = vrot.lane.b32.xlu1 %v212_v16, %s274_s26  ;;  %s283_s26 = smov 28  }
  0x22   :  { %103 = vrot.lane.b32.xlu0 %v213_v17, %s275_s2  ;;  %109 = vrot.lane.b32.xlu1 %v214_v18, %s276_s3  ;;  %s285_s3 = smov 20  }
  0x26   :  { %115 = vrot.lane.b32.xlu0 %v215_v19, %s277_s8  ;;  %121 = vrot.lane.b32.xlu1 %v216_v20, %s278_s9  ;;  %s287_s9 = smov 12  }
  0x2a   :  { %127 = vrot.lane.b32.xlu0 %v217_v21, %s279_s14  ;;  %133 = vrot.lane.b32.xlu1 %v218_v22, %s280_s15 }
  0x2e   :  { %139 = vrot.lane.b32.xlu0 %v219_v23, %s281_s20  ;;  %145 = vrot.lane.b32.xlu1 %v220_v24, %s282_s21 }
  0x32   :  { %151 = vrot.lane.b32.xlu0 %v221_v25, %s283_s26  ;;  %157 = vrot.lane.b32.xlu1 %v222_v26, %s284_s27 }
  0x36   :  { %163 = vrot.lane.b32.xlu0 %v223_v27, %s285_s3  ;;  %169 = vrot.lane.b32.xlu1 %v224_v28, %s286_s4 }
  0x3a   :  { %175 = vrot.lane.b32.xlu0 %v225_v29, %s287_s9  ;;  %181 = vrot.lane.b32.xlu1 %v226_v30, %s288_s10 }
  0x3e   :  { %187 = vrot.lane.b32.xlu0 %v227_v31, %s289_s0 }
  0x74   :  { %v8_v32 = vpop.permute.xlu0 %7   ;;  %v20_v33 = vpop.permute.xlu1 %19  }
  0x75   :  { %10 = vst.msk [vmem:[#allocation0] sm:$0x1] %vm9_vm1, %v8_v32   ;;  %vm105_vm1 = vcmask 523744  }
  0x78   :  { %v14_v34 = vpop.permute.xlu0 %13   ;;  %v26_v35 = vpop.permute.xlu1 %25  }
  0x79   :  { %16 = vst.msk [vmem:[#allocation0] sm:$0x1] %vm15_vm2, %v14_v34   ;;  %vm111_vm2 = vcmask 490944  }
  0x7a   :  { %22 = vst.msk [vmem:[#allocation0] sm:$0x1] %vm21_vm3, %v20_v33   ;;  %vm117_vm3 = vcmask 458144  }
  0x7b   :  { %28 = vst.msk [vmem:[#allocation0] sm:$0x1] %vm27_vm4, %v26_v35   ;;  %vm123_vm4 = vcmask 425344  }
  0x7c   :  { %v32_v36 = vpop.permute.xlu0 %31   ;;  %v38_v37 = vpop.permute.xlu1 %37  }
  0x7d   :  { %34 = vst.msk [vmem:[#allocation0] sm:$0x1] %vm33_vm5, %v32_v36   ;;  %vm129_vm5 = vcmask 392544  }
  0x7e   :  { %40 = vst.msk [vmem:[#allocation0] sm:$0x1] %vm39_vm6, %v38_v37   ;;  %vm135_vm6 = vcmask 359744  }
  0x80   :  { %v44_v38 = vpop.permute.xlu0 %43   ;;  %v50_v39 = vpop.permute.xlu1 %49  }
  0x81   :  { %46 = vst.msk [vmem:[#allocation0] sm:$0x1] %vm45_vm7, %v44_v38   ;;  %vm141_vm7 = vcmask 326944  }
  0x82   :  { %52 = vst.msk [vmem:[#allocation0] sm:$0x1] %vm51_vm8, %v50_v39   ;;  %vm147_vm8 = vcmask 294144  }
  0x84   :  { %v56_v40 = vpop.permute.xlu0 %55   ;;  %v62_v41 = vpop.permute.xlu1 %61  }
  0x85   :  { %58 = vst.msk [vmem:[#allocation0] sm:$0x1] %vm57_vm9, %v56_v40   ;;  %vm153_vm9 = vcmask 261344  }
  0x86   :  { %64 = vst.msk [vmem:[#allocation0] sm:$0x1] %vm63_vm10, %v62_v41   ;;  %vm159_vm10 = vcmask 228544  }
  0x88   :  { %v68_v42 = vpop.permute.xlu0 %67   ;;  %v74_v43 = vpop.permute.xlu1 %73  }
  0x89   :  { %70 = vst.msk [vmem:[#allocation0] sm:$0x1] %vm69_vm11, %v68_v42   ;;  %vm165_vm11 = vcmask 195744  }
  0x8a   :  { %76 = vst.msk [vmem:[#allocation0] sm:$0x1] %vm75_vm12, %v74_v43   ;;  %vm171_vm12 = vcmask 162944  }
  0x8c   :  { %v80_v44 = vpop.permute.xlu0 %79   ;;  %v86_v45 = vpop.permute.xlu1 %85  }
  0x8d   :  { %82 = vst.msk [vmem:[#allocation0] sm:$0x1] %vm81_vm13, %v80_v44   ;;  %vm177_vm13 = vcmask 130144  }
  0x8e   :  { %88 = vst.msk [vmem:[#allocation0] sm:$0x1] %vm87_vm14, %v86_v45   ;;  %vm183_vm14 = vcmask 97344  }
  0x90   :  { %v92_v46 = vpop.permute.xlu0 %91   ;;  %v98_v47 = vpop.permute.xlu1 %97  }
  0x91   :  { %94 = vst.msk [vmem:[#allocation0] sm:$0x1] %vm93_vm15, %v92_v46   ;;  %vm189_vm15 = vcmask 64544  }
  0x92   :  { %100 = vst.msk [vmem:[#allocation0] sm:$0x1] %vm99_vm0, %v98_v47  }
  0x94   :  { %v104_v48 = vpop.permute.xlu0 %103   ;;  %v110_v49 = vpop.permute.xlu1 %109  }
  0x95   :  { %106 = vst.msk [vmem:[#allocation0] sm:$0x1] %vm105_vm1, %v104_v48  }
  0x96   :  { %112 = vst.msk [vmem:[#allocation0] sm:$0x1] %vm111_vm2, %v110_v49  }
  0x98   :  { %v116_v50 = vpop.permute.xlu0 %115   ;;  %v122_v51 = vpop.permute.xlu1 %121  }
  0x99   :  { %118 = vst.msk [vmem:[#allocation0] sm:$0x1] %vm117_vm3, %v116_v50  }
  0x9a   :  { %124 = vst.msk [vmem:[#allocation0] sm:$0x1] %vm123_vm4, %v122_v51  }
  0x9c   :  { %v128_v52 = vpop.permute.xlu0 %127   ;;  %v134_v53 = vpop.permute.xlu1 %133  }
  0x9d   :  { %130 = vst.msk [vmem:[#allocation0] sm:$0x1] %vm129_vm5, %v128_v52  }
  0x9e   :  { %136 = vst.msk [vmem:[#allocation0] sm:$0x1] %vm135_vm6, %v134_v53  }
  0xa0   :  { %v140_v54 = vpop.permute.xlu0 %139   ;;  %v146_v55 = vpop.permute.xlu1 %145  }
  0xa1   :  { %142 = vst.msk [vmem:[#allocation0] sm:$0x1] %vm141_vm7, %v140_v54  }
  0xa2   :  { %148 = vst.msk [vmem:[#allocation0] sm:$0x1] %vm147_vm8, %v146_v55  }
  0xa4   :  { %v152_v56 = vpop.permute.xlu0 %151   ;;  %v158_v57 = vpop.permute.xlu1 %157  }
  0xa5   :  { %154 = vst.msk [vmem:[#allocation0] sm:$0x1] %vm153_vm9, %v152_v56  }
  0xa6   :  { %160 = vst.msk [vmem:[#allocation0] sm:$0x1] %vm159_vm10, %v158_v57  }
  0xa8   :  { %v164_v58 = vpop.permute.xlu0 %163   ;;  %v170_v59 = vpop.permute.xlu1 %169  }
  0xa9   :  { %166 = vst.msk [vmem:[#allocation0] sm:$0x1] %vm165_vm11, %v164_v58  }
  0xaa   :  { %172 = vst.msk [vmem:[#allocation0] sm:$0x1] %vm171_vm12, %v170_v59  }
  0xac   :  { %v176_v60 = vpop.permute.xlu0 %175   ;;  %v182_v61 = vpop.permute.xlu1 %181  }
  0xad   :  { %178 = vst.msk [vmem:[#allocation0] sm:$0x1] %vm177_vm13, %v176_v60  }
  0xae   :  { %184 = vst.msk [vmem:[#allocation0] sm:$0x1] %vm183_vm14, %v182_v61  }
  0xb0   :  { %v188_v62 = vpop.permute.xlu0 %187  }
  0xb1   :  { %190 = vst.msk [vmem:[#allocation0] sm:$0x1] %vm189_vm15, %v188_v62  }
  0xb8   :  { %v194_v63 = vld [vmem:[#allocation0] sm:$0x1] }
  0xb9   :  { %196 = vst [vmem:[%s400_s1] sm:$0x1] %v194_v63 }

// kernel: tile.14
= control target key start
LH: loop header
LB: loop body
LE: loop exit
PB: predicated region body
PF: predicated region fallthrough
CT: control target
= control target key end

     0   :  { %s28_s0 = inlined_call_operand.vmem [shape: f32[8], index: 0, kind: input, shape index: {}]   ;;  %s29_s1 = inlined_call_operand.vmem [shape: f32[16,8], index: 1, kind: output, shape index: {}]  }
   0x1   :  { %v4_v0 = vld [vmem:[%s28_s0] ss:$0 sm:$0xff] }
   0x2   :  { %5 = vst [vmem:[%s29_s1] sm:$0xff] %v4_v0  ;;  %8 = vst [vmem:[%s29_s1 + $0x8] sm:$0xff] %v4_v0 }

// kernel: tile.15
= control target key start
LH: loop header
LB: loop body
LE: loop exit
PB: predicated region body
PF: predicated region fallthrough
CT: control target
= control target key end

     0   :  { %s131_s10 = smov 120   ;;  %s132_s11 = smov 104   ;;  %vm3_vm0 = vcmask 64512   ;;  %vm9_vm1 = vcmask 1048512   ;;  %vm15_vm2 = vcmask 982912   ;;  %vm21_vm3 = vcmask 917312   ;;  %s207_s0 = inlined_call_operand.vmem [shape: f32[16,8], index: 0, kind: input, shape index: {}]   ;;  %s208_s1 = inlined_call_operand.vmem [shape: f32[1,128], index: 1, kind: output, shape index: {}]  }
   0x1   :  { %v101_v0 = vld [vmem:[%s207_s0 + $0xf] sm:$0x1]   ;;  %v103_v1 = vld [vmem:[%s207_s0 + $0xd] sm:$0x1]   ;;  %v102_v2 = vld [vmem:[%s207_s0 + $0xe] sm:$0x1]  }
   0x2   :  { %7 = vrot.lane.b32.xlu0 %v101_v0, %s131_s10  ;;  %19 = vrot.lane.b32.xlu1 %v103_v1, %s132_s11  ;;  %v104_v3 = vld [vmem:[%s207_s0 + $0xc] sm:$0x1]   ;;  %s133_s16 = smov 112   ;;  %s134_s17 = smov 96   ;;  %v105_v4 = vld [vmem:[%s207_s0 + $0xb] sm:$0x1]  }
   0x3   :  { %v106_v5 = vld [vmem:[%s207_s0 + $0xa] sm:$0x1]   ;;  %v2_v6 = vld [vmem:[%s207_s0] sm:$0x1]   ;;  %s135_s24 = smov 88   ;;  %s136_s25 = smov 80  }
   0x4   :  { %4 = vst.msk [vmem:[#allocation0] sm:$0x1] %vm3_vm0, %v2_v6   ;;  %v107_v7 = vld [vmem:[%s207_s0 + $0x9] sm:$0x1]   ;;  %v108_v8 = vld [vmem:[%s207_s0 + $0x8] sm:$0x1]  }
   0x5   :  { %s137_s30 = smov 72   ;;  %s138_s2 = smov 64   ;;  %v109_v9 = vld [vmem:[%s207_s0 + $0x7] sm:$0x1]   ;;  %v110_v10 = vld [vmem:[%s207_s0 + $0x6] sm:$0x1]  }
   0x6   :  { %13 = vrot.lane.b32.xlu0 %v102_v2, %s133_s16  ;;  %25 = vrot.lane.b32.xlu1 %v104_v3, %s134_s17  ;;  %s139_s7 = smov 56   ;;  %s140_s8 = smov 48   ;;  %v111_v11 = vld [vmem:[%s207_s0 + $0x5] sm:$0x1]   ;;  %v112_v12 = vld [vmem:[%s207_s0 + $0x4] sm:$0x1]  }
   0x7   :  { %s141_s13 = smov 40   ;;  %s142_s14 = smov 32   ;;  %v113_v13 = vld [vmem:[%s207_s0 + $0x3] sm:$0x1]   ;;  %v114_v14 = vld [vmem:[%s207_s0 + $0x2] sm:$0x1]  }
   0x8   :  { %s143_s19 = smov 24   ;;  %s144_s20 = smov 16   ;;  %v115_v15 = vld [vmem:[%s207_s0 + $0x1] sm:$0x1]   ;;  %vm27_vm4 = vcmask 851712   ;;  %vm33_vm5 = vcmask 786112  }
   0x9   :  { %s145_s0 = smov 8   ;;  %vm39_vm6 = vcmask 720512   ;;  %vm45_vm7 = vcmask 654912   ;;  %vm51_vm8 = vcmask 589312   ;;  %vm57_vm9 = vcmask 523712  }
   0xa   :  { %31 = vrot.lane.b32.xlu0 %v105_v4, %s135_s24  ;;  %37 = vrot.lane.b32.xlu1 %v106_v5, %s136_s25  ;;  %vm63_vm10 = vcmask 458112   ;;  %vm69_vm11 = vcmask 392512   ;;  %vm75_vm12 = vcmask 326912   ;;  %vm81_vm13 = vcmask 261312  }
   0xb   :  { %vm87_vm14 = vcmask 195712   ;;  %vm93_vm15 = vcmask 130112  }
   0xe   :  { %43 = vrot.lane.b32.xlu0 %v107_v7, %s137_s30  ;;  %49 = vrot.lane.b32.xlu1 %v108_v8, %s138_s2 }
  0x12   :  { %55 = vrot.lane.b32.xlu0 %v109_v9, %s139_s7  ;;  %61 = vrot.lane.b32.xlu1 %v110_v10, %s140_s8 }
  0x16   :  { %67 = vrot.lane.b32.xlu0 %v111_v11, %s141_s13  ;;  %73 = vrot.lane.b32.xlu1 %v112_v12, %s142_s14 }
  0x1a   :  { %79 = vrot.lane.b32.xlu0 %v113_v13, %s143_s19  ;;  %85 = vrot.lane.b32.xlu1 %v114_v14, %s144_s20 }
  0x1e   :  { %91 = vrot.lane.b32.xlu0 %v115_v15, %s145_s0 }
  0x74   :  { %v8_v16 = vpop.permute.xlu0 %7   ;;  %v20_v17 = vpop.permute.xlu1 %19  }
  0x75   :  { %10 = vst.msk [vmem:[#allocation0] sm:$0x1] %vm9_vm1, %v8_v16  }
  0x78   :  { %v14_v18 = vpop.permute.xlu0 %13   ;;  %v26_v19 = vpop.permute.xlu1 %25  }
  0x79   :  { %16 = vst.msk [vmem:[#allocation0] sm:$0x1] %vm15_vm2, %v14_v18  }
  0x7a   :  { %22 = vst.msk [vmem:[#allocation0] sm:$0x1] %vm21_vm3, %v20_v17  }
  0x7b   :  { %28 = vst.msk [vmem:[#allocation0] sm:$0x1] %vm27_vm4, %v26_v19  }
  0x7c   :  { %v32_v20 = vpop.permute.xlu0 %31   ;;  %v38_v21 = vpop.permute.xlu1 %37  }
  0x7d   :  { %34 = vst.msk [vmem:[#allocation0] sm:$0x1] %vm33_vm5, %v32_v20  }
  0x7e   :  { %40 = vst.msk [vmem:[#allocation0] sm:$0x1] %vm39_vm6, %v38_v21  }
  0x80   :  { %v44_v22 = vpop.permute.xlu0 %43   ;;  %v50_v23 = vpop.permute.xlu1 %49  }
  0x81   :  { %46 = vst.msk [vmem:[#allocation0] sm:$0x1] %vm45_vm7, %v44_v22  }
  0x82   :  { %52 = vst.msk [vmem:[#allocation0] sm:$0x1] %vm51_vm8, %v50_v23  }
  0x84   :  { %v56_v24 = vpop.permute.xlu0 %55   ;;  %v62_v25 = vpop.permute.xlu1 %61  }
  0x85   :  { %58 = vst.msk [vmem:[#allocation0] sm:$0x1] %vm57_vm9, %v56_v24  }
  0x86   :  { %64 = vst.msk [vmem:[#allocation0] sm:$0x1] %vm63_vm10, %v62_v25  }
  0x88   :  { %v68_v26 = vpop.permute.xlu0 %67   ;;  %v74_v27 = vpop.permute.xlu1 %73  }
  0x89   :  { %70 = vst.msk [vmem:[#allocation0] sm:$0x1] %vm69_vm11, %v68_v26  }
  0x8a   :  { %76 = vst.msk [vmem:[#allocation0] sm:$0x1] %vm75_vm12, %v74_v27  }
  0x8c   :  { %v80_v28 = vpop.permute.xlu0 %79   ;;  %v86_v29 = vpop.permute.xlu1 %85  }
  0x8d   :  { %82 = vst.msk [vmem:[#allocation0] sm:$0x1] %vm81_vm13, %v80_v28  }
  0x8e   :  { %88 = vst.msk [vmem:[#allocation0] sm:$0x1] %vm87_vm14, %v86_v29  }
  0x90   :  { %v92_v30 = vpop.permute.xlu0 %91  }
  0x91   :  { %94 = vst.msk [vmem:[#allocation0] sm:$0x1] %vm93_vm15, %v92_v30  }
  0x98   :  { %v98_v31 = vld [vmem:[#allocation0] sm:$0x1] }
  0x99   :  { %100 = vst [vmem:[%s208_s1] sm:$0x1] %v98_v31 }

// kernel: _lambda_.1
= control target key start
LH: loop header
LB: loop body
LE: loop exit
PB: predicated region body
PF: predicated region fallthrough
CT: control target
= control target key end

     0   :  { %s1837_s24 = smov 0   ;;  %s2187_s0 = inlined_call_operand.vmem [shape: f32[2,16,64], index: 0, kind: input, shape index: {}]   ;;  %s2188_s1 = inlined_call_operand.vmem [shape: f32[3,64,128], index: 1, kind: input, shape index: {}]   ;;  %s2189_s2 = inlined_call_operand.vmem [shape: f32[1,128], index: 2, kind: input, shape index: {}]   ;;  %s2190_s3 = inlined_call_operand.vmem [shape: f32[3,128,128], index: 3, kind: input, shape index: {}]   ;;  %s2191_s4 = inlined_call_operand.vmem [shape: f32[1,128], index: 4, kind: input, shape index: {}]   ;;  %s2192_s5 = inlined_call_operand.vmem [shape: f32[2,128,128], index: 5, kind: input, shape index: {}]   ;;  %s2193_s6 = inlined_call_operand.vmem [shape: f32[1,128], index: 6, kind: input, shape index: {}]   ;;  %s2194_s7 = inlined_call_operand.vmem [shape: f32[2,2,16,128], index: 7, kind: output, shape index: {}]  }
   0x1 LB: > { %s1123_s25 = sadd.s32 4294967295, %s1794_s24   ;;  %p1127_p0 = scmp.ge.s32.totalorder %s1794_s24, 1  ;;  %s1794_s24 = sphi %s1837_s24, %s17_s24  }
   0x2   : > { %p237_p1 = scmp.lt.s32.totalorder %s1794_s24, 3 }
   0x4   : > { %p238_p2 = pnand %p1127_p0, %p237_p1 }
   0x5   : > { %v1132_v0 = vld [vmem:[%s2188_s1 + $0x40] sm:$0xff] (!%p238_p2)  ;;  %v1133_v1 = vld [vmem:[%s2188_s1 + $0x48] sm:$0xff] (!%p238_p2)  ;;  %v1134_v2 = vld [vmem:[%s2188_s1 + $0x50] sm:$0xff] (!%p238_p2)  ;;  %p269_p3 = scmp.lt.s32.totalorder (!%p238_p2), %s1123_s25, 1  ;;  %vm281_vm0 = vcmask (!%p238_p2), 516096   ;;  %v1796_v8 = vmov (!%p238_p2), 0.0  }
   0x6   : > { %241 = sbr.rel (%p238_p2) target bundleno = 806 (0x326), region = 48  ;;  %v1563_v3 = vpack.c.bf16 (!%p238_p2), %v1133_v1, %v1132_v0  ;;  %v1135_v4 = vld [vmem:[%s2188_s1 + $0x58] sm:$0xff] (!%p238_p2)  ;;  %v1136_v6 = vld [vmem:[%s2188_s1 + $0x60] sm:$0xff] (!%p238_p2)  ;;  %v1137_v7 = vld [vmem:[%s2188_s1 + $0x68] sm:$0xff] (!%p238_p2)  ;;  %282 = vst.msk [vmem:[#allocation2] sm:$0x1] (!%p238_p2), %vm281_vm0, %v1796_v8 }
   0x7   : > { %v1567_v5 = vpack.c.bf16 (!%p238_p2), %v1135_v4, %v1134_v2  ;;  %283 = vst.msk [vmem:[#allocation2 + $0x11] sm:$0x1] (!%p238_p2), %vm281_vm0, %v1796_v8  ;;  %575 = vst [vmem:[#allocation3] sm:$0x1] (!%p238_p2), %v1796_v8  ;;  %vm284_vm1 = vcmask (!%p238_p2), 523264   ;;  %v1571_v9 = vpack.c.bf16 (!%p238_p2), %v1137_v7, %v1136_v6  ;;  %v1138_v10 = vld [vmem:[%s2188_s1 + $0x70] sm:$0xff] (!%p238_p2) }
   0x8   : > { %576 = vst [vmem:[#allocation3 + $0x11] sm:$0x1] (!%p238_p2), %v1796_v8  ;;  %1564 = vmatprep.subr.bf16.mxu0 (!%p238_p2), %v1563_v3  ;;  %v1139_v11 = vld [vmem:[%s2188_s1 + $0x78] sm:$0xff] (!%p238_p2)  ;;  %v1155_v14 = vld [vmem:[%s2190_s3 + $0x80] sm:$0xff] (!%p238_p2)  ;;  %v1156_v16 = vld [vmem:[%s2190_s3 + $0x88] sm:$0xff] (!%p238_p2) }
   0x9   : > { %1566 = vmatpush3.bf16.msra.mxu0 (!%p238_p2), %v1563_v3  ;;  %v1575_v15 = vpack.c.bf16 (!%p238_p2), %v1139_v11, %v1138_v10  ;;  %v1157_v17 = vld [vmem:[%s2190_s3 + $0x90] sm:$0xff] (!%p238_p2)  ;;  %v1158_v18 = vld [vmem:[%s2190_s3 + $0x98] sm:$0xff] (!%p238_p2)  ;;  %v289_v19 = vld [vmem:[%s2188_s1] sm:$0xff] (!%p238_p2)  ;;  %v1611_v21 = vpack.c.bf16 (!%p238_p2), %v1156_v16, %v1155_v14 }
   0xa   : > { %1568 = vmatprep.subr.bf16.mxu0 (!%p238_p2), %v1567_v5  ;;  %v290_v20 = vld [vmem:[%s2188_s1 + $0x8] sm:$0xff] (!%p238_p2)  ;;  %v1615_v22 = vpack.c.bf16 (!%p238_p2), %v1158_v18, %v1157_v17  ;;  %v1159_v23 = vld [vmem:[%s2190_s3 + $0xa0] sm:$0xff] (!%p238_p2)  ;;  %v291_v27 = vld [vmem:[%s2188_s1 + $0x10] sm:$0xff] (!%p238_p2) }
   0xb   : > { %v1160_v24 = vld [vmem:[%s2190_s3 + $0xa8] sm:$0xff] (!%p238_p2)  ;;  %1612 = vmatprep.subr.bf16.mxu1 (!%p238_p2), %v1611_v21  ;;  %v1579_v25 = vpack.c.bf16 (!%p238_p2), %v290_v20, %v289_v19  ;;  %v292_v28 = vld [vmem:[%s2188_s1 + $0x18] sm:$0xff] (!%p238_p2)  ;;  %v1161_v30 = vld [vmem:[%s2190_s3 + $0xb0] sm:$0xff] (!%p238_p2) }
   0xc   : > { %1614 = vmatpush3.bf16.msra.mxu1 (!%p238_p2), %v1611_v21  ;;  %v1619_v29 = vpack.c.bf16 (!%p238_p2), %v1160_v24, %v1159_v23  ;;  %v1162_v31 = vld [vmem:[%s2190_s3 + $0xb8] sm:$0xff] (!%p238_p2)  ;;  %v1583_v33 = vpack.c.bf16 (!%p238_p2), %v292_v28, %v291_v27  ;;  %v293_v35 = vld [vmem:[%s2188_s1 + $0x20] sm:$0xff] (!%p238_p2)  ;;  %v294_v36 = vld [vmem:[%s2188_s1 + $0x28] sm:$0xff] (!%p238_p2) }
   0xd   : > { %s2196_s25 = smov (!%p269_p3, %s1123_s25), 1  ;;  %1570 = vmatpush3.bf16.msra.mxu0 %v1567_v5  ;;  %1616 = vmatprep.subr.bf16.mxu1 %v1615_v22  ;;  %v1623_v37 = vpack.c.bf16 %v1162_v31, %v1161_v30  ;;  %v1163_v38 = vld [vmem:[%s2190_s3 + $0xc0] sm:$0xff]  ;;  %v1164_v39 = vld [vmem:[%s2190_s3 + $0xc8] sm:$0xff]  ;;  %v1587_v40 = vpack.c.bf16 %v294_v36, %v293_v35  ;;  %v295_v41 = vld [vmem:[%s2188_s1 + $0x30] sm:$0xff] }
   0xe   : > { %s1209_s15 = sshll.u32 %s2196_s25, 4  ;;  %1572 = vmatprep.subr.bf16.mxu0 %v1571_v9  ;;  %v296_v42 = vld [vmem:[%s2188_s1 + $0x38] sm:$0xff]  ;;  %v1627_v43 = vpack.c.bf16 %v1164_v39, %v1163_v38  ;;  %v1144_v45 = vld [vmem:[%s2188_s1 + $0x80] sm:$0xff]  ;;  %v1145_v46 = vld [vmem:[%s2188_s1 + $0x88] sm:$0xff]  ;;  %s1210_s9 = sshll.u32 %s2196_s25, 5 }
   0xf   : > { %s273_s20 = scalar_lea.vmem %s2187_s0, %s1209_s15  ;;  %v1591_v44 = vpack.c.bf16 %v296_v42, %v295_v41  ;;  %v1595_v47 = vpack.c.bf16 %v1145_v46, %v1144_v45  ;;  %v1146_v48 = vld [vmem:[%s2188_s1 + $0x90] sm:$0xff]  ;;  %v1147_v49 = vld [vmem:[%s2188_s1 + $0x98] sm:$0xff]  ;;  %v1148_v53 = vld [vmem:[%s2188_s1 + $0xa0] sm:$0xff]  ;;  %s278_s14 = scalar_lea.vmem %s2194_s7, %s1210_s9 }
  0x10   : > { %v279_v12 = vld [vmem:[%s273_s20] sm:$0xff]  ;;  %v280_v13 = vld [vmem:[%s273_s20 + $0x8] sm:$0xff]  ;;  %1618 = vmatpush3.bf16.msra.mxu1 %v1615_v22  ;;  %v1599_v51 = vpack.c.bf16 %v1147_v49, %v1146_v48  ;;  %v1150_v56 = vld [vmem:[%s2188_s1 + $0xb0] sm:$0xff] }
  0x11   : > { %285 = vst.msk [vmem:[#allocation2 + $0x1] sm:$0xff] %vm284_vm1, %v279_v12  ;;  %286 = vst.msk [vmem:[#allocation2 + $0x9] sm:$0xff] %vm284_vm1, %v280_v13  ;;  %1574 = vmatpush3.bf16.msra.mxu0 %v1571_v9  ;;  %1620 = vmatprep.subr.bf16.mxu1 %v1619_v29  ;;  %v1149_v54 = vld [vmem:[%s2188_s1 + $0xa8] sm:$0xff]  ;;  %v1151_v57 = vld [vmem:[%s2188_s1 + $0xb8] sm:$0xff] }
  0x12   : > { %1576 = vmatprep.subr.bf16.mxu0 %v1575_v15  ;;  %v1603_v55 = vpack.c.bf16 %v1149_v54, %v1148_v53  ;;  %v1607_v58 = vpack.c.bf16 %v1151_v57, %v1150_v56  ;;  %v1165_v60 = vld [vmem:[%s2190_s3 + $0xd0] sm:$0xff]  ;;  %v1166_v61 = vld [vmem:[%s2190_s3 + $0xd8] sm:$0xff]  ;;  %v1167_v63 = vld [vmem:[%s2190_s3 + $0xe0] sm:$0xff] }
  0x13   : > { %v1631_v62 = vpack.c.bf16 %v1166_v61, %v1165_v60  ;;  %v1168_v0 = vld [vmem:[%s2190_s3 + $0xe8] sm:$0xff]  ;;  %v1169_v2 = vld [vmem:[%s2190_s3 + $0xf0] sm:$0xff]  ;;  %v1170_v3 = vld [vmem:[%s2190_s3 + $0xf8] sm:$0xff] }
  0x14   : > { %1622 = vmatpush3.bf16.msra.mxu1 %v1619_v29  ;;  %v1635_v1 = vpack.c.bf16 %v1168_v0, %v1167_v63  ;;  %v1639_v4 = vpack.c.bf16 %v1170_v3, %v1169_v2  ;;  %v581_v5 = vld [vmem:[%s2190_s3] sm:$0xff]  ;;  %v582_v6 = vld [vmem:[%s2190_s3 + $0x8] sm:$0xff]  ;;  %v876_v10 = vld [vmem:[%s2192_s5 + $0x10] sm:$0xff] }
  0x15   : > { %1578 = vmatpush3.bf16.msra.mxu0 %v1575_v15  ;;  %1624 = vmatprep.subr.bf16.mxu1 %v1623_v37  ;;  %v1643_v7 = vpack.c.bf16 %v582_v6, %v581_v5  ;;  %v874_v8 = vld [vmem:[%s2192_s5] sm:$0xff]  ;;  %v875_v9 = vld [vmem:[%s2192_s5 + $0x8] sm:$0xff]  ;;  %v877_v12 = vld [vmem:[%s2192_s5 + $0x18] sm:$0xff] }
  0x16   : > { %1580 = vmatprep.subr.bf16.mxu0 %v1579_v25  ;;  %v1707_v11 = vpack.c.bf16 %v875_v9, %v874_v8  ;;  %v1711_v13 = vpack.c.bf16 %v877_v12, %v876_v10  ;;  %v878_v14 = vld [vmem:[%s2192_s5 + $0x20] sm:$0xff]  ;;  %v879_v15 = vld [vmem:[%s2192_s5 + $0x28] sm:$0xff]  ;;  %v880_v17 = vld [vmem:[%s2192_s5 + $0x30] sm:$0xff] }
  0x17   : > { %v1715_v16 = vpack.c.bf16 %v879_v15, %v878_v14  ;;  %v881_v18 = vld [vmem:[%s2192_s5 + $0x38] sm:$0xff]  ;;  %v882_v20 = vld [vmem:[%s2192_s5 + $0x40] sm:$0xff]  ;;  %v883_v21 = vld [vmem:[%s2192_s5 + $0x48] sm:$0xff] }
  0x18   : > { %v297_v26 = vld [vmem:[#allocation2 + $0x1] sm:$0xff]  ;;  %v298_v32 = vld [vmem:[#allocation2 + $0x9] sm:$0xff]  ;;  %1626 = vmatpush3.bf16.msra.mxu1 %v1623_v37  ;;  %v1719_v19 = vpack.c.bf16 %v881_v18, %v880_v17  ;;  %v1723_v22 = vpack.c.bf16 %v883_v21, %v882_v20  ;;  %v885_v24 = vld [vmem:[%s2192_s5 + $0x58] sm:$0xff] }
  0x19   : > { %1347 = vmatprep.mubr.msk.f32.mxu0 %vm284_vm1, %v297_v26  ;;  %v287_v34 = vld [vmem:[#allocation2] sm:$0xff]  ;;  %1628 = vmatprep.subr.bf16.mxu1 %v1627_v43  ;;  %v288_v50 = vld [vmem:[#allocation2 + $0x8] sm:$0xff]  ;;  %v884_v23 = vld [vmem:[%s2192_s5 + $0x50] sm:$0xff] }
  0x1a   : > { %1348 = vmatmul.mubr.msk.f32.vlgmr.msra.gmra.mrb[0].mxu0 %vm284_vm1, %v298_v32  ;;  %v470_v52 = vld [vmem:[#allocation2 + $0x2] sm:$0xff]  ;;  %v471_v59 = vld [vmem:[#allocation2 + $0xa] sm:$0xff]  ;;  %v1154_v29 = vld [vmem:[%s2189_s2] ss:$0 sm:$0xff] }
  0x1b   : > { %1582 = vmatpush3.bf16.msra.mxu0 %v1579_v25  ;;  %1366 = vmatprep.mubr.msk.f32.mxu0 %vm284_vm1, %v287_v34  ;;  %v1727_v25 = vpack.c.bf16 %v885_v24, %v884_v23  ;;  %v886_v26 = vld [vmem:[%s2192_s5 + $0x60] sm:$0xff]  ;;  %v887_v27 = vld [vmem:[%s2192_s5 + $0x68] sm:$0xff]  ;;  %v583_v34 = vld [vmem:[%s2190_s3 + $0x10] sm:$0xff] }
  0x1c   : > { %1584 = vmatprep.subr.bf16.mxu0 %v1583_v33  ;;  %1630 = vmatpush3.bf16.msra.mxu1 %v1627_v43  ;;  %v1731_v28 = vpack.c.bf16 %v887_v27, %v886_v26  ;;  %v584_v35 = vld [vmem:[%s2190_s3 + $0x18] sm:$0xff]  ;;  %v585_v39 = vld [vmem:[%s2190_s3 + $0x20] sm:$0xff]  ;;  %v587_v42 = vld [vmem:[%s2190_s3 + $0x30] sm:$0xff] }
  0x1d   : > { %1632 = vmatprep.subr.bf16.mxu1 %v1631_v62  ;;  %v1647_v38 = vpack.c.bf16 %v584_v35, %v583_v34  ;;  %v588_v43 = vld [vmem:[%s2190_s3 + $0x38] sm:$0xff]  ;;  %v589_v46 = vld [vmem:[%s2190_s3 + $0x40] sm:$0xff]  ;;  %v591_v49 = vld [vmem:[%s2190_s3 + $0x50] sm:$0xff] }
  0x1e   : > { %v1655_v45 = vpack.c.bf16 %v588_v43, %v587_v42  ;;  %v594_v53 = vld [vmem:[%s2190_s3 + $0x68] sm:$0xff]  ;;  %v596_v56 = vld [vmem:[%s2190_s3 + $0x78] sm:$0xff]  ;;  %v1173_v61 = vld [vmem:[%s2190_s3 + $0x110] sm:$0xff] }
  0x1f   : > { %1586 = vmatpush3.bf16.msra.mxu0 %v1583_v33  ;;  %v1176_v2 = vld [vmem:[%s2190_s3 + $0x128] sm:$0xff]  ;;  %v1177_v5 = vld [vmem:[%s2190_s3 + $0x130] sm:$0xff]  ;;  %v1178_v6 = vld [vmem:[%s2190_s3 + $0x138] sm:$0xff] }
  0x20   : > { %1588 = vmatprep.subr.bf16.mxu0 %v1587_v40  ;;  %1634 = vmatpush3.bf16.msra.mxu1 %v1631_v62  ;;  %v1174_v62 = vld [vmem:[%s2190_s3 + $0x118] sm:$0xff]  ;;  %v1179_v8 = vld [vmem:[%s2190_s3 + $0x140] sm:$0xff]  ;;  %v1180_v9 = vld [vmem:[%s2190_s3 + $0x148] sm:$0xff] }
  0x21   : > { %1636 = vmatprep.subr.bf16.mxu1 %v1635_v1  ;;  %v1679_v63 = vpack.c.bf16 %v1174_v62, %v1173_v61  ;;  %v1691_v10 = vpack.c.bf16 %v1180_v9, %v1179_v8  ;;  %v1182_v12 = vld [vmem:[%s2190_s3 + $0x158] sm:$0xff]  ;;  %v1183_v14 = vld [vmem:[%s2190_s3 + $0x160] sm:$0xff]  ;;  %v1184_v15 = vld [vmem:[%s2190_s3 + $0x168] sm:$0xff] }
  0x22   : > { %v1185_v17 = vld [vmem:[%s2190_s3 + $0x170] sm:$0xff]  ;;  %v1186_v18 = vld [vmem:[%s2190_s3 + $0x178] sm:$0xff]  ;;  %v1189_v24 = vld [vmem:[%s2192_s5 + $0x80] sm:$0xff] }
  0x23   : > { %1590 = vmatpush3.bf16.msra.mxu0 %v1587_v40  ;;  %v586_v40 = vld [vmem:[%s2190_s3 + $0x28] sm:$0xff]  ;;  %v888_v21 = vld [vmem:[%s2192_s5 + $0x70] sm:$0xff]  ;;  %v1187_v27 = vld [vmem:[%s2191_s4] ss:$0 sm:$0xff] }
  0x24   : > { %1592 = vmatprep.subr.bf16.mxu0 %v1591_v44  ;;  %1638 = vmatpush3.bf16.msra.mxu1 %v1635_v1  ;;  %v1651_v41 = vpack.c.bf16 %v586_v40, %v585_v39  ;;  %v1175_v1 = vld [vmem:[%s2190_s3 + $0x120] sm:$0xff]  ;;  %v1195_v40 = vld [vmem:[%s2192_s5 + $0xb0] sm:$0xff] }
  0x25   : > { %1640 = vmatprep.subr.bf16.mxu1 %v1639_v4  ;;  %v1197_v43 = vld [vmem:[%s2192_s5 + $0xc0] sm:$0xff] }
  0x27   : > { %1594 = vmatpush3.bf16.msra.mxu0 %v1591_v44 }
  0x28   : > { %1596 = vmatprep.subr.bf16.mxu0 %v1595_v47  ;;  %1642 = vmatpush3.bf16.msra.mxu1 %v1639_v4  ;;  %v1683_v4 = vpack.c.bf16 %v1176_v2, %v1175_v1 }
  0x29   : > { %1644 = vmatprep.subr.bf16.mxu1 %v1643_v7 }
  0x2a   : > { %1367 = vmatmul.mubr.msk.f32.vlgmr.msra.gmra.mrb[0].mxu0 %vm284_vm1, %v288_v50  ;;  %v592_v50 = vld [vmem:[%s2190_s3 + $0x58] sm:$0xff] }
  0x2b   : > { %1598 = vmatpush3.bf16.msra.mxu0 %v1595_v47  ;;  %1385 = vmatprep.mubr.msk.f32.mxu0 %vm284_vm1, %v470_v52  ;;  %v590_v47 = vld [vmem:[%s2190_s3 + $0x48] sm:$0xff]  ;;  %v593_v52 = vld [vmem:[%s2190_s3 + $0x60] sm:$0xff] }
  0x2c   : > { %1600 = vmatprep.subr.bf16.mxu0 %v1599_v51  ;;  %v1659_v48 = vpack.c.bf16 %v590_v47, %v589_v46  ;;  %v1667_v54 = vpack.c.bf16 %v594_v53, %v593_v52  ;;  %v1199_v46 = vld [vmem:[%s2192_s5 + $0xd0] sm:$0xff]  ;;  %v1200_v47 = vld [vmem:[%s2192_s5 + $0xd8] sm:$0xff] }
  0x2d   : > { %v1203_v52 = vld [vmem:[%s2192_s5 + $0xf0] sm:$0xff]  ;;  %v1204_v53 = vld [vmem:[%s2192_s5 + $0xf8] sm:$0xff] }
  0x2f   : > { %1602 = vmatpush3.bf16.msra.mxu0 %v1599_v51  ;;  %v1663_v51 = vpack.c.bf16 %v592_v50, %v591_v49  ;;  %v1201_v49 = vld [vmem:[%s2192_s5 + $0xe0] sm:$0xff]  ;;  %v1202_v50 = vld [vmem:[%s2192_s5 + $0xe8] sm:$0xff] }
  0x30   : > { %1604 = vmatprep.subr.bf16.mxu0 %v1603_v55 }
  0x33   : > { %1606 = vmatpush3.bf16.msra.mxu0 %v1603_v55  ;;  %v595_v55 = vld [vmem:[%s2190_s3 + $0x70] sm:$0xff] }
  0x34   : > { %1608 = vmatprep.subr.bf16.mxu0 %v1607_v58  ;;  %v1671_v57 = vpack.c.bf16 %v596_v56, %v595_v55  ;;  %v1188_v55 = vld [vmem:[%s2193_s6] ss:$0 sm:$0xff] }
  0x37   : > { %1610 = vmatpush3.bf16.msra.mxu0 %v1607_v58  ;;  %v1171_v58 = vld [vmem:[%s2190_s3 + $0x100] sm:$0xff] }
  0x38   : > { %1708 = vmatprep.subr.bf16.mxu0 %v1707_v11 }
  0x3a   : > { %1386 = vmatmul.mubr.msk.f32.vlgmr.msra.gmra.mrb[0].mxu0 %vm284_vm1, %v471_v59  ;;  %v1172_v59 = vld [vmem:[%s2190_s3 + $0x108] sm:$0xff] }
  0x3b   : > { %1710 = vmatpush3.bf16.msra.mxu0 %v1707_v11  ;;  %v1675_v60 = vpack.c.bf16 %v1172_v59, %v1171_v58  ;;  %v1181_v11 = vld [vmem:[%s2190_s3 + $0x150] sm:$0xff] }
  0x3c   : > { %1712 = vmatprep.subr.bf16.mxu0 %v1711_v13 }
  0x3f   : > { %1714 = vmatpush3.bf16.msra.mxu0 %v1711_v13  ;;  %v1695_v13 = vpack.c.bf16 %v1182_v12, %v1181_v11 }
  0x40   : > { %1716 = vmatprep.subr.bf16.mxu0 %v1715_v16 }
  0x43   : > { %1718 = vmatpush3.bf16.msra.mxu0 %v1715_v16  ;;  %v1699_v16 = vpack.c.bf16 %v1184_v15, %v1183_v14 }
  0x44   : > { %1720 = vmatprep.subr.bf16.mxu0 %v1719_v19 }
  0x47   : > { %1722 = vmatpush3.bf16.msra.mxu0 %v1719_v19  ;;  %v1703_v19 = vpack.c.bf16 %v1186_v18, %v1185_v17 }
  0x48   : > { %1724 = vmatprep.subr.bf16.mxu0 %v1723_v22 }
  0x4b   : > { %1726 = vmatpush3.bf16.msra.mxu0 %v1723_v22  ;;  %v889_v22 = vld [vmem:[%s2192_s5 + $0x78] sm:$0xff] }
  0x4c   : > { %1728 = vmatprep.subr.bf16.mxu0 %v1727_v25  ;;  %v1735_v23 = vpack.c.bf16 %v889_v22, %v888_v21 }
  0x4f   : > { %1730 = vmatpush3.bf16.msra.mxu0 %v1727_v25  ;;  %v1190_v25 = vld [vmem:[%s2192_s5 + $0x88] sm:$0xff] }
  0x50   : > { %1732 = vmatprep.subr.bf16.mxu0 %v1731_v28  ;;  %v1739_v26 = vpack.c.bf16 %v1190_v25, %v1189_v24 }
  0x53   : > { %1734 = vmatpush3.bf16.msra.mxu0 %v1731_v28 }
  0x54   : > { %1736 = vmatprep.subr.bf16.mxu0 %v1735_v23 }
  0x57   : > { %1738 = vmatpush3.bf16.msra.mxu0 %v1735_v23 }
  0x58   : > { %1740 = vmatprep.subr.bf16.mxu0 %v1739_v26 }
 0x10d   : > { %v1387_v30 = vpop.f32.mrb[0].mxu0 }
 0x10e   : > { %v572_v31 = vadd.f32 %v1387_v30, %v1154_v29  ;;  %v553_v32 = vpop.f32.mrb[1].mxu0 }
 0x10f   : > { %v571_v33 = vadd.f32 %v1154_v29, %v553_v32  ;;  %v1191_v32 = vld [vmem:[%s2192_s5 + $0x90] sm:$0xff] }
 0x110   : > { %v574_v36 = vmax.f32 %v572_v31, 0.0 }
 0x111   : > { %v573_v37 = vmax.f32 %v571_v33, 0.0  ;;  %v1192_v33 = vld [vmem:[%s2192_s5 + $0x98] sm:$0xff] }
 0x112   : > { %578 = vst [vmem:[#allocation3 + $0x9] sm:$0xff] %v574_v36 }
 0x113   : > { %577 = vst [vmem:[#allocation3 + $0x1] sm:$0xff] %v573_v37  ;;  %1420 = vmatprep.mubr.f32.mxu1 %v573_v37  ;;  %v1193_v37 = vld [vmem:[%s2192_s5 + $0xa0] sm:$0xff] }
 0x114   : > { %1421 = vmatmul.mubr.f32.vlgmr.msra.gmra.mrb[0].mxu1 %v574_v36  ;;  %v1743_v36 = vpack.c.bf16 %v1192_v33, %v1191_v32 }
 0x115   : > { %1646 = vmatpush3.bf16.msra.mxu1 %v1643_v7  ;;  %v1687_v7 = vpack.c.bf16 %v1178_v6, %v1177_v5 }
 0x116   : > { %1648 = vmatprep.subr.bf16.mxu1 %v1647_v38 }
 0x119   : > { %1650 = vmatpush3.bf16.msra.mxu1 %v1647_v38  ;;  %v767_v20 = vld [vmem:[#allocation3 + $0xa] sm:$0xff] }
 0x11a   : > { %v579_v44 = vld [vmem:[#allocation3] sm:$0xff]  ;;  %1652 = vmatprep.subr.bf16.mxu1 %v1651_v41  ;;  %v580_v0 = vld [vmem:[#allocation3 + $0x8] sm:$0xff]  ;;  %v1194_v38 = vld [vmem:[%s2192_s5 + $0xa8] sm:$0xff] }
 0x11b   : > { %1455 = vmatprep.mubr.f32.mxu1 %v579_v44  ;;  %v766_v3 = vld [vmem:[#allocation3 + $0x2] sm:$0xff]  ;;  %v1747_v39 = vpack.c.bf16 %v1194_v38, %v1193_v37  ;;  %v1198_v44 = vld [vmem:[%s2192_s5 + $0xc8] sm:$0xff] }
 0x11d   : > { %1654 = vmatpush3.bf16.msra.mxu1 %v1651_v41  ;;  %v1196_v41 = vld [vmem:[%s2192_s5 + $0xb8] sm:$0xff] }
 0x11e   : > { %1656 = vmatprep.subr.bf16.mxu1 %v1655_v45  ;;  %v1751_v42 = vpack.c.bf16 %v1196_v41, %v1195_v40 }
 0x121   : > { %1658 = vmatpush3.bf16.msra.mxu1 %v1655_v45  ;;  %v1755_v45 = vpack.c.bf16 %v1198_v44, %v1197_v43 }
 0x122   : > { %1660 = vmatprep.subr.bf16.mxu1 %v1659_v48 }
 0x125   : > { %1662 = vmatpush3.bf16.msra.mxu1 %v1659_v48  ;;  %v1759_v48 = vpack.c.bf16 %v1200_v47, %v1199_v46 }
 0x126   : > { %1664 = vmatprep.subr.bf16.mxu1 %v1663_v51 }
 0x129   : > { %1666 = vmatpush3.bf16.msra.mxu1 %v1663_v51  ;;  %v1763_v51 = vpack.c.bf16 %v1202_v50, %v1201_v49 }
 0x12a   : > { %1668 = vmatprep.subr.bf16.mxu1 %v1667_v54 }
 0x12d   : > { %1670 = vmatpush3.bf16.msra.mxu1 %v1667_v54  ;;  %v1767_v54 = vpack.c.bf16 %v1204_v53, %v1203_v52 }
 0x12e   : > { %1672 = vmatprep.subr.bf16.mxu1 %v1671_v57 }
 0x131   : > { %1674 = vmatpush3.bf16.msra.mxu1 %v1671_v57 }
 0x132   : > { %1676 = vmatprep.subr.bf16.mxu1 %v1675_v60 }
 0x134   : > { %1456 = vmatmul.mubr.f32.vlgmr.msra.gmra.mrb[0].mxu1 %v580_v0 }
 0x135   : > { %1678 = vmatpush3.bf16.msra.mxu1 %v1675_v60  ;;  %1490 = vmatprep.mubr.f32.mxu1 %v766_v3 }
 0x136   : > { %1680 = vmatprep.subr.bf16.mxu1 %v1679_v63 }
 0x139   : > { %1682 = vmatpush3.bf16.msra.mxu1 %v1679_v63 }
 0x13a   : > { %1684 = vmatprep.subr.bf16.mxu1 %v1683_v4 }
 0x13d   : > { %1686 = vmatpush3.bf16.msra.mxu1 %v1683_v4 }
 0x13e   : > { %1688 = vmatprep.subr.bf16.mxu1 %v1687_v7 }
 0x141   : > { %1690 = vmatpush3.bf16.msra.mxu1 %v1687_v7 }
 0x142   : > { %1692 = vmatprep.subr.bf16.mxu1 %v1691_v10 }
 0x145   : > { %1694 = vmatpush3.bf16.msra.mxu1 %v1691_v10 }
 0x146   : > { %1696 = vmatprep.subr.bf16.mxu1 %v1695_v13 }
 0x149   : > { %1698 = vmatpush3.bf16.msra.mxu1 %v1695_v13 }
 0x14a   : > { %1700 = vmatprep.subr.bf16.mxu1 %v1699_v16 }
 0x14d   : > { %1702 = vmatpush3.bf16.msra.mxu1 %v1699_v16 }
 0x14e   : > { %1704 = vmatprep.subr.bf16.mxu1 %v1703_v19 }
 0x151   : > { %1706 = vmatpush3.bf16.msra.mxu1 %v1703_v19 }
 0x154   : > { %1491 = vmatmul.mubr.f32.vlgmr.msra.gmra.mrb[0].mxu1 %v767_v20 }
 0x227   : > { %v1492_v28 = vpop.f32.mrb[0].mxu1 }
 0x228   : > { %v870_v29 = vadd.f32 %v1492_v28, %v1187_v27  ;;  %v851_v30 = vpop.f32.mrb[1].mxu1 }
 0x229   : > { %v869_v31 = vadd.f32 %v1187_v27, %v851_v30 }
 0x22a   : > { %v872_v35 = vmax.f32 %v870_v29, 0.0 }
 0x22b   : > { %v871_v34 = vmax.f32 %v869_v31, 0.0 }
 0x22d   : > { %1525 = vmatprep.mubr.f32.mxu0 %v871_v34 }
 0x22e   : > { %1526 = vmatmul.mubr.f32.vlgmr.msra.gmra.mrb[2].mxu0 %v872_v35 }
 0x22f   : > { %1742 = vmatpush3.bf16.msra.mxu0 %v1739_v26  ;;  %1560 = vmatprep.mubr.f32.mxu0 %v871_v34 }
 0x230   : > { %1744 = vmatprep.subr.bf16.mxu0 %v1743_v36 }
 0x233   : > { %1746 = vmatpush3.bf16.msra.mxu0 %v1743_v36 }
 0x234   : > { %1748 = vmatprep.subr.bf16.mxu0 %v1747_v39 }
 0x237   : > { %1750 = vmatpush3.bf16.msra.mxu0 %v1747_v39 }
 0x238   : > { %1752 = vmatprep.subr.bf16.mxu0 %v1751_v42 }
 0x23b   : > { %1754 = vmatpush3.bf16.msra.mxu0 %v1751_v42 }
 0x23c   : > { %1756 = vmatprep.subr.bf16.mxu0 %v1755_v45 }
 0x23f   : > { %1758 = vmatpush3.bf16.msra.mxu0 %v1755_v45 }
 0x240   : > { %1760 = vmatprep.subr.bf16.mxu0 %v1759_v48 }
 0x243   : > { %1762 = vmatpush3.bf16.msra.mxu0 %v1759_v48 }
 0x244   : > { %1764 = vmatprep.subr.bf16.mxu0 %v1763_v51 }
 0x247   : > { %1766 = vmatpush3.bf16.msra.mxu0 %v1763_v51 }
 0x248   : > { %1768 = vmatprep.subr.bf16.mxu0 %v1767_v54 }
 0x24b   : > { %1770 = vmatpush3.bf16.msra.mxu0 %v1767_v54 }
 0x24e   : > { %1561 = vmatmul.mubr.f32.vlgmr.msra.gmra.mrb[4].mxu0 %v872_v35 }
 0x301   : > { %v1527_v56 = vpop.f32.mrb[2].mxu0 }
 0x302   : > { %v968_v57 = vadd.f32 %v1527_v56, %v1188_v55  ;;  %v962_v58 = vpop.f32.mrb[3].mxu0 }
 0x303   : > { %v963_v59 = vadd.f32 %v1188_v55, %v962_v58 }
 0x304   : > { %972 = vst [vmem:[%s278_s14 + $0x8] sm:$0xff] %v968_v57 }
 0x305   : > { %971 = vst [vmem:[%s278_s14] sm:$0xff] %v963_v59 }
 0x321   : > { %v1562_v60 = vpop.f32.mrb[4].mxu0 }
 0x322   : > { %v1062_v61 = vadd.f32 %v1562_v60, %v1188_v55  ;;  %v1056_v62 = vpop.f32.mrb[5].mxu0 }
 0x323   : > { %v1057_v63 = vadd.f32 %v1188_v55, %v1056_v62 }
 0x324   : > { %1206 = vst [vmem:[%s278_s14 + $0x18] sm:$0xff] %v1062_v61 }
 0x325   : > { %1205 = vst [vmem:[%s278_s14 + $0x10] sm:$0xff] %v1057_v63 }
 0x326 PF: > { %s17_s24 = sadd.s32 1, %s1794_s24  }
 0x327   : > { %p14_p4 = scmp.ge.s32.totalorder %s17_s24, 4  }
 0x329   :  { %16 = sbr.rel (!%p14_p4) target bundleno = 1 (0x1), region = 84 }

</bundles_post_ra>
